<compile_context>
chip_gen: v6e
topology: v6e:2x2x1
jax: 0.10.0
libtpu: 0.0.40
codegen_flags: <defaults>
</compile_context>

<pallas_src>
import jax
import jax.numpy as jnp
from jax.experimental import pallas as pl
from jax.experimental.pallas import tpu as pltpu


def _round_up(x: int, m: int) -> int:
    return ((x + m - 1) // m) * m


def _sublane_pack(dtype) -> int:
    """Sublane packing granularity: 8 rows for 32-bit, 16 for bf16, 32 for int8/fp8."""
    return 8 * max(1, 4 // jnp.dtype(dtype).itemsize)


def _pick_tiles(num_patches: int, batch: int, compute_dtype, *,
                max_row_tile: int = 512, target_rows: int = 512,
                min_steps: int = 8, max_waste_frac: float = 0.15):
    """Choose (TR rows-per-image-tile, BB images-per-grid-step).

    TR steps in multiples of the dtype sublane packing (never an illegal
    block), prefers exact divisors of N, otherwise low masked waste, and is
    as large as possible.  BB merges whole images into one grid step when N
    is small (amortizes per-step overhead) while trying to keep at least
    `min_steps` grid steps for pipeline depth / megacore split.
    """
    pack = _sublane_pack(compute_dtype)
    cap = min(num_patches, max_row_tile)
    if cap < pack:
        tr = num_patches                          # tiny N: full-extent block is legal
    else:
        cands = list(range(pack, cap + 1, pack))
        exact = [t for t in cands if num_patches % t == 0]
        if exact:
            pool = exact
        else:
            low_waste = [t for t in cands
                         if pl.cdiv(num_patches, t) * t - num_patches
                         <= max_waste_frac * pl.cdiv(num_patches, t) * t]
            pool = low_waste or cands
        tr = max(pool)
    t_steps = pl.cdiv(num_patches, tr)

    bb = 1
    if tr % pack == 0:   # batch-merge reshape in the kernel stays tile-aligned
        divisors = [d for d in range(1, batch + 1)
                    if batch % d == 0 and d * tr <= target_rows]
        if divisors:
            deep = [d for d in divisors if t_steps * (batch // d) >= min_steps]
            bb = max(deep or divisors)
    return tr, bb


def _extract_patches(x: jnp.ndarray, patch_size: int, compute_dtype) -> jnp.ndarray:
    """hvit `patch` + flatten(-3,-1): (B,C,H,W) -> (B, N, C*p*p) with flat
    index c*p*p + ph*p + pw (matches torch unfold/unfold/flatten/permute)."""
    if x.ndim == 5:
        assert x.shape[1] == 1, "5-D input must have a singleton dim 1"
        x = jnp.squeeze(x, axis=1)
    B, C, H, W = x.shape
    p = patch_size
    assert H % p == 0 and W % p == 0, "patch size must divide image H and W"
    hi, wi = H // p, W // p
    x = x.astype(compute_dtype)                   # cast BEFORE the permute copy: half the HBM bytes
    x = x.reshape(B, C, hi, p, wi, p)
    x = jnp.transpose(x, (0, 2, 4, 1, 3, 5))      # (B, hi, wi, C, p, p) -- one fused XLA pass
    return x.reshape(B, hi * wi, C * p * p)       # (B, N, K)


def prepare_patch_encoder_params(weight, bias, pos_emb, compute_dtype=jnp.bfloat16):
    """One-time parameter prep (run once, NOT per forward):
      * weight (D, K) -> transposed (K, D), zero-padded to (Kp, Dp) with
        Kp = round_up(K, 128) (full MXU contraction lanes) and
        Dp = round_up(D, 128) (lane-dense, unmasked stores), cast to compute_dtype.
      * bias folded into the positional-embedding table -> (N, Dp) float32.
    """
    D, K = weight.shape
    Kp, Dp = _round_up(K, 128), _round_up(D, 128)
    wt = weight.T.astype(compute_dtype)                         # (K, D)
    wt = jnp.pad(wt, ((0, Kp - K), (0, Dp - D)))                # (Kp, Dp)
    pos_b = (pos_emb + bias[None, :]).astype(jnp.float32)       # (N, D)
    pos_b = jnp.pad(pos_b, ((0, 0), (0, Dp - D)))               # (N, Dp)
    return {"wt": wt, "pos_b": pos_b, "D": D, "K": K}


def _patch_encode_kernel(x_ref, wt_ref, pb_ref, o_ref):
    # x_ref : (BB, TR, Kp) compute dtype  -- BB images' patch rows for this tile
    # wt_ref: (Kp, Dp)     compute dtype  -- constant block index -> DMA'd once
    # pb_ref: (TR, Dp)     f32 pos+bias   -- re-fetched only when the row tile changes
    # o_ref : (BB, TR, Dp) out dtype
    bb, tr, kp = x_ref.shape
    dp = o_ref.shape[-1]
    if bb == 1:
        y = jnp.dot(x_ref[0], wt_ref[...], preferred_element_type=jnp.float32)
        o_ref[0] = (y + pb_ref[...]).astype(o_ref.dtype)
    else:
        # Tile-aligned leading-dim collapse (guaranteed: TR % sublane-pack == 0).
        x2 = x_ref[...].reshape(bb * tr, kp)
        y = jnp.dot(x2, wt_ref[...], preferred_element_type=jnp.float32)
        y = y.reshape(bb, tr, dp) + pb_ref[...]        # f32 add, broadcast over BB
        o_ref[...] = y.astype(o_ref.dtype)


def patch_encoder_forward(x, params, patch_size, *,
                          compute_dtype=jnp.bfloat16, out_dtype=jnp.float32,
                          row_tile=None, batch_block=None, return_padded=False):
    """x: (B,C,H,W); params from prepare_patch_encoder_params. Returns (B,N,D)
    (or the lane-padded (B,N,Dp) slab when return_padded=True)."""
    wt, pos_b, D, K = params["wt"], params["pos_b"], params["D"], params["K"]
    Kp, Dp = wt.shape
    N = pos_b.shape[0]

    flat = _extract_patches(x, patch_size, compute_dtype)       # (B, N, K)
    B, Nf, Kf = flat.shape
    assert Nf == N, "pos-embedding table size must match the number of patches"
    assert Kf == K, "weight in_features must equal C * patch_size**2"
    if Kp != K:
        # Zero-pad contraction dim; XLA fuses the pad into the transpose write.
        flat = jnp.pad(flat, ((0, 0), (0, 0), (0, Kp - K)))     # (B, N, Kp)

    TR, BB = _pick_tiles(N, B, compute_dtype)
    if row_tile is not None:
        TR = row_tile
    if batch_block is not None:
        BB = batch_block
    pack = _sublane_pack(compute_dtype)
    assert TR <= N and (TR % 8 == 0 or TR == N), "row tile violates the (8,128) block rule"
    assert B % BB == 0 and (BB == 1 or TR % pack == 0), "invalid batch block"

    T = pl.cdiv(N, TR)           # row tiles per image (last one masked if TR does not divide N)
    Bg = B // BB
    grid = (T, Bg)               # row-tile axis OUTERMOST: pos block index is constant across
                                 # the inner batch loop, so its DMA is skipped on those steps.

    cs = jnp.dtype(compute_dtype).itemsize
    osz = jnp.dtype(out_dtype).itemsize
    block_bytes = (2 * BB * TR * Kp * cs        # patch blocks (double-buffered)
                   + 2 * Kp * Dp * cs           # weight (constant index; 2 bufs by default)
                   + 2 * TR * Dp * 4            # pos + bias (f32)
                   + 2 * BB * TR * Dp * osz)    # output blocks
    vmem_limit = int(min(max(2 * block_bytes + (2 << 20), 32 << 20), 56 << 20))

    cost = pl.CostEstimate(
        flops=2 * B * T * TR * Kp * Dp,
        transcendentals=0,
        bytes_accessed=(B * N * Kp * cs         # patches read once
                        + Kp * Dp * cs          # weight read once (resident)
                        + T * TR * Dp * 4       # pos + bias read once per row tile
                        + B * N * Dp * osz),    # output written once
    )

    out = pl.pallas_call(
        _patch_encode_kernel,
        out_shape=jax.ShapeDtypeStruct((B, N, Dp), out_dtype),
        grid_spec=pltpu.PrefetchScalarGridSpec(
            num_scalar_prefetch=0,
            grid=grid,
            in_specs=[
                pl.BlockSpec((BB, TR, Kp), lambda t, b: (b, t, 0)),   # patches
                pl.BlockSpec((Kp, Dp),     lambda t, b: (0, 0)),      # W^T (resident)
                pl.BlockSpec((TR, Dp),     lambda t, b: (t, 0)),      # pos + bias
            ],
            out_specs=pl.BlockSpec((BB, TR, Dp), lambda t, b: (b, t, 0)),
        ),
        compiler_params=pltpu.CompilerParams(
            dimension_semantics=("parallel", "parallel"),
            vmem_limit_bytes=vmem_limit,
        ),
        cost_estimate=cost,
    )(flat, wt, pos_b)

    if return_padded or Dp == D:
        return out                      # (B, N, Dp); already lane-dense, no extra copy
    # Un-padding slice materializes one copy; in production prefer D % 128 == 0
    # (Dp == D) or return_padded=True and let the consumer slice lazily.
    return out[..., :D]


if __name__ == "__main__":
    # Small shapes consistent with the module's forward.
    img_size = 16
    patch_size = 4
    num_channels = 4
    projection_dim = 32
    batch = 2

    num_patches = (img_size // patch_size) ** 2          # 16
    in_features = num_channels * patch_size ** 2         # 64

    key = jax.random.PRNGKey(0)
    kx, kw, kb, kp = jax.random.split(key, 4)

    x = jax.random.normal(kx, (batch, num_channels, img_size, img_size),
                          dtype=jnp.float32)
    # nn.Linear-style uniform(-1/sqrt(K), 1/sqrt(K)); nn.Embedding ~ normal(0,1).
    limit = 1.0 / jnp.sqrt(jnp.float32(in_features))
    weight = jax.random.uniform(kw, (projection_dim, in_features),
                                minval=-limit, maxval=limit, dtype=jnp.float32)
    bias = jax.random.uniform(kb, (projection_dim,),
                              minval=-limit, maxval=limit, dtype=jnp.float32)
    pos_emb = jax.random.normal(kp, (num_patches, projection_dim),
                                dtype=jnp.float32)

    # Pure-JAX reference of the same math (high-precision matmul).
    flat_ref = _extract_patches(x, patch_size, jnp.float32)   # (B, N, K)
    ref = (jnp.einsum("bnk,dk->bnd", flat_ref, weight,
                      precision=jax.lax.Precision.HIGHEST)
           + bias[None, None, :] + pos_emb[None, :, :])

    # 1) f32 operands / f32 output, auto tiling: exactness of the kernel structure.
    params_f32 = prepare_patch_encoder_params(weight, bias, pos_emb,
                                              compute_dtype=jnp.float32)
    out_f32 = jax.block_until_ready(
        patch_encoder_forward(x, params_f32, patch_size,
                              compute_dtype=jnp.float32, out_dtype=jnp.float32))
    assert out_f32.shape == (batch, num_patches, projection_dim)
    assert jnp.allclose(out_f32, ref, atol=1e-4, rtol=1e-4)

    # 2) f32 with forced small tiles: exercises the multi-step (row-tile, batch) grid
    #    and the once-per-row-tile pos fetch.
    out_tiled = jax.block_until_ready(
        patch_encoder_forward(x, params_f32, patch_size,
                              compute_dtype=jnp.float32, out_dtype=jnp.float32,
                              row_tile=8, batch_block=1))
    assert jnp.allclose(out_tiled, ref, atol=1e-4, rtol=1e-4)

    # 3) bf16 operands / bf16 output (halved output writeback), f32 accumulation.
    params_bf16 = prepare_patch_encoder_params(weight, bias, pos_emb,
                                               compute_dtype=jnp.bfloat16)
    out_bf16 = jax.block_until_ready(
        patch_encoder_forward(x, params_bf16, patch_size,
                              compute_dtype=jnp.bfloat16, out_dtype=jnp.bfloat16))
    assert out_bf16.shape == (batch, num_patches, projection_dim)
    assert out_bf16.dtype == jnp.bfloat16
    assert jnp.allclose(out_bf16.astype(jnp.float32), ref, atol=5e-2, rtol=5e-2)

    print("KERNEL_OK")
</pallas_src>

<mosaic_0001>
module attributes {stable_mosaic.version = 11 : i64} {
  func.func @_patch_encode_kernel(%arg0: i32, %arg1: i32, %arg2: memref<2x16x128xf32, #tpu.memory_space<vmem>>, %arg3: memref<128x128xf32, #tpu.memory_space<vmem>>, %arg4: memref<16x128xf32, #tpu.memory_space<vmem>>, %arg5: memref<2x16x128xf32, #tpu.memory_space<vmem>>) attributes {dimension_semantics = [#tpu.dimension_semantics<parallel>, #tpu.dimension_semantics<parallel>], iteration_bounds = array<i64: 1, 1>, scalar_prefetch = 0 : i64, scratch_operands = 0 : i64, tpu.core_type = #tpu.core_type<tc>, window_params = [{transform_indices = @transform_0, window_bounds = array<i64: 2, 16, 128>}, {pipeline_mode = #tpu.pipeline_mode<synchronous>, transform_indices = @transform_1, window_bounds = array<i64: 128, 128>}, {transform_indices = @transform_2, window_bounds = array<i64: 16, 128>}, {transform_indices = @transform_3, window_bounds = array<i64: 2, 16, 128>}]} {
    %c0 = arith.constant 0 : index
    %c0_0 = arith.constant 0 : index
    %c0_1 = arith.constant 0 : index
    %0 = vector.load %arg2[%c0, %c0_0, %c0_1] : memref<2x16x128xf32, #tpu.memory_space<vmem>>, vector<2x16x128xf32>
    %1 = vector.shape_cast %0 : vector<2x16x128xf32> to vector<32x128xf32>
    %c0_2 = arith.constant 0 : index
    %c0_3 = arith.constant 0 : index
    %2 = vector.load %arg3[%c0_2, %c0_3] : memref<128x128xf32, #tpu.memory_space<vmem>>, vector<128x128xf32>
    %cst = arith.constant dense<0.000000e+00> : vector<32x128xf32>
    %3 = tpu.matmul %1, %2, %cst {dimension_numbers = #tpu.dot_dimension_numbers<[1], [0], [0], [1], [0, 0, 1, 1], [], []>} : vector<32x128xf32>, vector<128x128xf32>, vector<32x128xf32> -> vector<32x128xf32>
    %4 = vector.shape_cast %3 : vector<32x128xf32> to vector<2x16x128xf32>
    %c0_4 = arith.constant 0 : index
    %c0_5 = arith.constant 0 : index
    %5 = vector.load %arg4[%c0_4, %c0_5] : memref<16x128xf32, #tpu.memory_space<vmem>>, vector<16x128xf32>
    %6 = vector.shape_cast %5 : vector<16x128xf32> to vector<1x16x128xf32>
    %7 = vector.broadcast %6 : vector<1x16x128xf32> to vector<2x16x128xf32>
    %8 = arith.addf %4, %7 : vector<2x16x128xf32>
    %c0_6 = arith.constant 0 : index
    %c0_7 = arith.constant 0 : index
    %c0_8 = arith.constant 0 : index
    %9 = vector.load %arg5[%c0_6, %c0_7, %c0_8] : memref<2x16x128xf32, #tpu.memory_space<vmem>>, vector<2x16x128xf32>
    tpu.vector_store %arg5[%c0_6, %c0_7, %c0_8], %8 {strides = array<i32>} : memref<2x16x128xf32, #tpu.memory_space<vmem>>, vector<2x16x128xf32>,
    return
  }
  func.func @transform_0(%arg0: i32, %arg1: i32) -> (i32, i32, i32) {
    %c0_i32 = arith.constant 0 : i32
    %c0_i32_0 = arith.constant 0 : i32
    return %arg1, %arg0, %c0_i32 : i32, i32, i32
  }
  func.func @transform_1(%arg0: i32, %arg1: i32) -> (i32, i32) {
    %c0_i32 = arith.constant 0 : i32
    %c0_i32_0 = arith.constant 0 : i32
    %c0_i32_1 = arith.constant 0 : i32
    return %c0_i32, %c0_i32_0 : i32, i32
  }
  func.func @transform_2(%arg0: i32, %arg1: i32) -> (i32, i32) {
    %c0_i32 = arith.constant 0 : i32
    %c0_i32_0 = arith.constant 0 : i32
    return %arg0, %c0_i32 : i32, i32
  }
  func.func @transform_3(%arg0: i32, %arg1: i32) -> (i32, i32, i32) {
    %c0_i32 = arith.constant 0 : i32
    %c0_i32_0 = arith.constant 0 : i32
    return %arg1, %arg0, %c0_i32 : i32, i32, i32
  }
}

</mosaic_0001>

<bundles_post_ra>
// kernel: tpu_custom_call.1
= control target key start
LH: loop header
LB: loop body
LE: loop exit
PB: predicated region body
PF: predicated region fallthrough
CT: control target
= control target key end

     0   :  { %8 = vsyncpa [#allocation3], 0  ;;  %s421_s0 = inlined_call_operand.hbm [shape: f32[2,16,128], index: 0, kind: input, shape index: {}]   ;;  %s422_s1 = inlined_call_operand.hbm [shape: f32[128,128], index: 1, kind: input, shape index: {}]   ;;  %s423_s2 = inlined_call_operand.hbm [shape: f32[16,128], index: 2, kind: input, shape index: {}]   ;;  %s424_s3 = inlined_call_operand.hbm [shape: f32[2,16,128], index: 3, kind: output, shape index: {}]  }
   0x1   :  { %9 = vsyncpa [#allocation6], 0 }
   0x2   :  { %10 = vsyncpa [#allocation4], 0  ;;  %s371_s12 = smov [#allocation5]   ;;  %s372_s14 = smov [#allocation2]  }
   0x3   :  { %s28_s13 = sshll.u32 %s371_s12, 4  ;;  %s16_s15 = sshll.u32 %s372_s14, 4  ;;  %s29_s13 = int_to_ptr.vmem [resolvable:$true] %s28_s13  ;;  %s17_s15 = int_to_ptr.vmem [resolvable:$true] %s16_s15 }
   0x4   :  { %s293_s16 = scalar_lea.vmem %s29_s13, 2048  ;;  %p298_p1 = scmp.lt.s32.totalorder %s29_s13, %s29_s13 }
   0x5   :  { %p294_p0 = scmp.ne.s32.totalorder %s29_s13, %s293_s16  ;;  %p299_p2 = scmp.lt.s32.totalorder %s293_s16, %s293_s16 }
   0x7   :  { %p300_p3 = por %p299_p2, %p298_p1 }
   0x9   :  { %p301_p4 = pnand %p300_p3, %p294_p0 }
   0xb   :  { %304 = shalt.err (!%p301_p4)
}
   0xc   :  { %s373_s17 = smov 128   ;;  %s374_s18 = smov 8  }
   0xd   :  { %34 = dma.hbm_to_vmem [thread:$0]  %s422_s1, 2048, %s29_s13, [#allocation6], %s373_s17, %s373_s17, %s374_s18  }
   0xe   :  { %s313_s21 = scalar_lea.vmem %s17_s15, 512  ;;  %p318_p6 = scmp.lt.s32.totalorder %s17_s15, %s17_s15 }
   0xf   :  { %p314_p5 = scmp.ne.s32.totalorder %s17_s15, %s313_s21  ;;  %p319_p7 = scmp.lt.s32.totalorder %s313_s21, %s313_s21 }
  0x11   :  { %p320_p8 = por %p319_p7, %p318_p6 }
  0x13   :  { %p321_p9 = pnand %p320_p8, %p314_p5 }
  0x15   :  { %324 = shalt.err (!%p321_p9)
}
  0x16   :  { %22 = dma.hbm_to_vmem [thread:$0]  %s421_s0, 512, %s17_s15, [#allocation3], %s373_s17, %s373_s17, %s374_s18  }
  0x17   :  { %s375_s24 = smov [#allocation7]  }
  0x18   :  { %s40_s25 = sshll.u32 %s375_s24, 4  ;;  %s41_s25 = int_to_ptr.vmem [resolvable:$true] %s40_s25 }
  0x19   :  { %s333_s26 = scalar_lea.vmem %s41_s25, 256  ;;  %p338_p11 = scmp.lt.s32.totalorder %s41_s25, %s41_s25 }
  0x1a   :  { %p334_p10 = scmp.ne.s32.totalorder %s41_s25, %s333_s26  ;;  %p339_p12 = scmp.lt.s32.totalorder %s333_s26, %s333_s26 }
  0x1c   :  { %p340_p13 = por %p339_p12, %p338_p11 }
  0x1e   :  { %p341_p0 = pnand %p340_p13, %p334_p10 }
  0x20   :  { %344 = shalt.err (!%p341_p0)
}
  0x21   :  { %46 = dma.hbm_to_vmem [thread:$0]  %s423_s2, 256, %s41_s25, [#allocation6], %s373_s17, %s373_s17, %s374_s18  }
  0x22   :  { %365 = dma.done.wait [#allocation3], 512  }
  0x23   :  { %366 = vsyncadd [#allocation3], 4294966784 }
  0x24   :  { %367 = dma.done.wait [#allocation6], 2304  }
  0x25   :  { %368 = vsyncadd [#allocation6], 4294964992  ;;  %v75_v0 = vld [vmem:[#allocation5 + $0x78] sm:$0xff]  ;;  %v74_v1 = vld [vmem:[#allocation5 + $0x70] sm:$0xff]  ;;  %s376_s0 = smov [#allocation8]  }
  0x26   :  { %209 = vmatprep.subr.mxu0 %v75_v0  ;;  %247 = vmatprep.subr.mxu1 %v75_v0  ;;  %v73_v2 = vld [vmem:[#allocation5 + $0x68] sm:$0xff]  ;;  %v72_v3 = vld [vmem:[#allocation5 + $0x60] sm:$0xff]  ;;  %v71_v4 = vld [vmem:[#allocation5 + $0x58] sm:$0xff]  ;;  %s176_s2 = sshll.u32 %s376_s0, 4  ;;  %s177_s2 = int_to_ptr.vmem [resolvable:$true] %s176_s2 }
  0x27   :  { %210 = vmatpush3.msra.mxu0 %v75_v0  ;;  %263 = vmatpush3.msra.mxu1 %v75_v0  ;;  %v70_v5 = vld [vmem:[#allocation5 + $0x50] sm:$0xff]  ;;  %v69_v6 = vld [vmem:[#allocation5 + $0x48] sm:$0xff]  ;;  %v68_v7 = vld [vmem:[#allocation5 + $0x40] sm:$0xff]  ;;  %s345_s28 = scalar_lea.vmem %s177_s2, 512  ;;  %p350_p2 = scmp.lt.s32.totalorder %s177_s2, %s177_s2 }
  0x28   :  { %211 = vmatprep.subr.mxu0 %v74_v1  ;;  %248 = vmatprep.subr.mxu1 %v74_v1  ;;  %v67_v8 = vld [vmem:[#allocation5 + $0x38] sm:$0xff]  ;;  %v66_v9 = vld [vmem:[#allocation5 + $0x30] sm:$0xff]  ;;  %v65_v10 = vld [vmem:[#allocation5 + $0x28] sm:$0xff]  ;;  %p346_p1 = scmp.ne.s32.totalorder %s177_s2, %s345_s28  ;;  %p351_p3 = scmp.lt.s32.totalorder %s345_s28, %s345_s28 }
  0x29   :  { %212 = vmatpush3.msra.mxu0 %v74_v1  ;;  %264 = vmatpush3.msra.mxu1 %v74_v1  ;;  %v64_v11 = vld [vmem:[#allocation5 + $0x20] sm:$0xff]  ;;  %v63_v12 = vld [vmem:[#allocation5 + $0x18] sm:$0xff]  ;;  %v62_v13 = vld [vmem:[#allocation5 + $0x10] sm:$0xff] }
  0x2a   :  { %213 = vmatprep.subr.mxu0 %v73_v2  ;;  %249 = vmatprep.subr.mxu1 %v73_v2  ;;  %v61_v14 = vld [vmem:[#allocation5 + $0x8] sm:$0xff]  ;;  %v60_v15 = vld [vmem:[#allocation5] sm:$0xff]  ;;  %v58_v17 = vld [vmem:[#allocation2 + $0x10] sm:$0xff]  ;;  %p352_p4 = por %p351_p3, %p350_p2 }
  0x2b   :  { %214 = vmatpush3.msra.mxu0 %v73_v2  ;;  %265 = vmatpush3.msra.mxu1 %v73_v2  ;;  %v56_v16 = vld [vmem:[#allocation2] sm:$0xff]  ;;  %v57_v18 = vld [vmem:[#allocation2 + $0x8] sm:$0xff]  ;;  %v59_v19 = vld [vmem:[#allocation2 + $0x18] sm:$0xff] }
  0x2c   :  { %215 = vmatprep.subr.mxu0 %v72_v3  ;;  %250 = vmatprep.subr.mxu1 %v72_v3  ;;  %v162_v20 = vld [vmem:[#allocation7 + $0x8] sm:$0xff]  ;;  %v161_v23 = vld [vmem:[#allocation7] sm:$0xff]  ;;  %p353_p5 = pnand %p352_p4, %p346_p1 }
  0x2d   :  { %216 = vmatpush3.msra.mxu0 %v72_v3  ;;  %266 = vmatpush3.msra.mxu1 %v72_v3 }
  0x2e   :  { %217 = vmatprep.subr.mxu0 %v71_v4  ;;  %251 = vmatprep.subr.mxu1 %v71_v4 }
  0x2f   :  { %218 = vmatpush3.msra.mxu0 %v71_v4  ;;  %267 = vmatpush3.msra.mxu1 %v71_v4 }
  0x30   :  { %219 = vmatprep.subr.mxu0 %v70_v5  ;;  %252 = vmatprep.subr.mxu1 %v70_v5 }
  0x31   :  { %220 = vmatpush3.msra.mxu0 %v70_v5  ;;  %268 = vmatpush3.msra.mxu1 %v70_v5 }
  0x32   :  { %221 = vmatprep.subr.mxu0 %v69_v6  ;;  %253 = vmatprep.subr.mxu1 %v69_v6 }
  0x33   :  { %222 = vmatpush3.msra.mxu0 %v69_v6  ;;  %269 = vmatpush3.msra.mxu1 %v69_v6 }
  0x34   :  { %223 = vmatprep.subr.mxu0 %v68_v7  ;;  %254 = vmatprep.subr.mxu1 %v68_v7 }
  0x35   :  { %224 = vmatpush3.msra.mxu0 %v68_v7  ;;  %270 = vmatpush3.msra.mxu1 %v68_v7 }
  0x36   :  { %225 = vmatprep.subr.mxu0 %v67_v8  ;;  %255 = vmatprep.subr.mxu1 %v67_v8 }
  0x37   :  { %226 = vmatpush3.msra.mxu0 %v67_v8  ;;  %271 = vmatpush3.msra.mxu1 %v67_v8 }
  0x38   :  { %227 = vmatprep.subr.mxu0 %v66_v9  ;;  %256 = vmatprep.subr.mxu1 %v66_v9 }
  0x39   :  { %228 = vmatpush3.msra.mxu0 %v66_v9  ;;  %272 = vmatpush3.msra.mxu1 %v66_v9 }
  0x3a   :  { %229 = vmatprep.subr.mxu0 %v65_v10  ;;  %257 = vmatprep.subr.mxu1 %v65_v10 }
  0x3b   :  { %230 = vmatpush3.msra.mxu0 %v65_v10  ;;  %273 = vmatpush3.msra.mxu1 %v65_v10 }
  0x3c   :  { %231 = vmatprep.subr.mxu0 %v64_v11  ;;  %258 = vmatprep.subr.mxu1 %v64_v11 }
  0x3d   :  { %232 = vmatpush3.msra.mxu0 %v64_v11  ;;  %274 = vmatpush3.msra.mxu1 %v64_v11 }
  0x3e   :  { %233 = vmatprep.subr.mxu0 %v63_v12  ;;  %259 = vmatprep.subr.mxu1 %v63_v12 }
  0x3f   :  { %234 = vmatpush3.msra.mxu0 %v63_v12  ;;  %275 = vmatpush3.msra.mxu1 %v63_v12 }
  0x40   :  { %235 = vmatprep.subr.mxu0 %v62_v13  ;;  %260 = vmatprep.subr.mxu1 %v62_v13 }
  0x41   :  { %236 = vmatpush3.msra.mxu0 %v62_v13  ;;  %276 = vmatpush3.msra.mxu1 %v62_v13 }
  0x42   :  { %237 = vmatprep.subr.mxu0 %v61_v14  ;;  %261 = vmatprep.subr.mxu1 %v61_v14 }
  0x43   :  { %238 = vmatpush3.msra.mxu0 %v61_v14  ;;  %277 = vmatpush3.msra.mxu1 %v61_v14 }
  0x44   :  { %239 = vmatprep.subr.mxu0 %v60_v15  ;;  %262 = vmatprep.subr.mxu1 %v60_v15 }
  0x45   :  { %240 = vmatpush3.msra.mxu0 %v60_v15  ;;  %278 = vmatpush3.msra.mxu1 %v60_v15 }
  0x46   :  { %241 = vmatprep.mubr.f32.mxu0 %v56_v16  ;;  %244 = vmatprep.mubr.f32.mxu1 %v58_v17 }
  0x47   :  { %242 = vmatmul.mubr.f32.vlgmr.msra.gmra.mxu0 %v57_v18  ;;  %245 = vmatmul.mubr.f32.vlgmr.msra.gmra.mxu1 %v59_v19 }
 0x107   :  { %v243_v21 = vpop.f32.mrf.mxu0  ;;  %v246_v22 = vpop.f32.mrf.mxu1 }
 0x108   :  { %v164_v24 = vadd.f32 %v243_v21, %v162_v20  ;;  %v166_v25 = vadd.f32 %v246_v22, %v162_v20 }
 0x109   :  { %v142_v26 = vpop.f32.mrf.mxu0  ;;  %v152_v27 = vpop.f32.mrf.mxu1 }
 0x10a   :  { %168 = vst [vmem:[#allocation8 + $0x8] sm:$0xff] %v164_v24  ;;  %170 = vst [vmem:[#allocation8 + $0x18] sm:$0xff] %v166_v25  ;;  %v163_v28 = vadd.f32 %v161_v23, %v142_v26  ;;  %v165_v29 = vadd.f32 %v161_v23, %v152_v27 }
 0x10c   :  { %167 = vst [vmem:[#allocation8] sm:$0xff] %v163_v28  ;;  %169 = vst [vmem:[#allocation8 + $0x10] sm:$0xff] %v165_v29 }
 0x10d   :  { %356 = shalt.err (!%p353_p5)
}
 0x10e   :  { %182 = dma.vmem_to_hbm [thread:$0]  %s177_s2, 512, %s424_s3, [#allocation4], %s373_s17, %s373_s17, %s374_s18  }
 0x10f   :  { %369 = dma.done.wait [#allocation4], 512  }
 0x110   :  { %370 = vsyncadd [#allocation4], 4294966784 }
 0x111   :  { %186 = vsyncpa [#allocation3], 1 }
 0x112   :  { %187 = vsyncpa [#allocation6], 1 }
 0x113   :  { %188 = vsyncpa [#allocation4], 1 }

</bundles_post_ra>
